<compile_context>
chip_gen: v7x
topology: tpu7x:2x2x1
jax: 0.10.0
libtpu: 0.0.40
codegen_flags: <defaults>
</compile_context>

<pallas_src>
import jax
import jax.numpy as jnp
import numpy as np
from jax.experimental import pallas as pl
from jax.experimental.pallas import tpu as pltpu


# ---------------------------------------------------------------- kernel ----

def _onehot_flat_kernel(ids_ref, sel_ref, lanev_ref, o_ref):
    # ids_ref  : (TM, C)   int32   row ids
    # sel_ref  : (C, C*V)  float32 static spread matrix, sel[c, c*V:(c+1)*V]=1
    # lanev_ref: (1, C*V)  float32 static per-lane target id (lane % V)
    # o_ref    : (TM, C*V) float32 flattened one-hot output
    ids = ids_ref[...].astype(jnp.float32)                       # (TM, C)
    # MXU: place channel c's id on every lane of channel c's V-wide slot.
    spread = jnp.dot(ids, sel_ref[...],
                     preferred_element_type=jnp.float32)         # (TM, C*V)
    # Single VALU compare + select; OOB/negative ids never match lane%V -> 0.
    o_ref[...] = (spread == lanev_ref[...]).astype(jnp.float32)  # dense store


# --------------------------------------------------------------- wrapper ----

def one_hot_flatten(x, num_classes, *, tm=4096):
    """Pallas equivalent of flatten(F.one_hot(x, num_classes).float(), -2)."""
    x = jnp.asarray(x)
    if x.ndim < 1:
        raise ValueError("OneHot expects at least 1-D input")
    lead = x.shape[:-1]
    c_dim = int(x.shape[-1])
    v = int(num_classes)
    cv = c_dim * v

    n = int(np.prod(lead)) if lead else 1
    rows = x.reshape(n, c_dim).astype(jnp.int32)

    # Row tile: multiple of 8 sublanes, capped at `tm`.  The ragged last block
    # (n % tm_eff != 0) is masked by Pallas on writeback -- no pad/slice copy.
    tm_eff = max(8, min(int(tm), pl.cdiv(n, 8) * 8))
    grid = (pl.cdiv(n, tm_eff),)

    # Static spread matrix S: S[c, c*V + k] = 1 for k in [0, V).
    sel_np = np.zeros((c_dim, cv), np.float32)
    for c in range(c_dim):
        sel_np[c, c * v:(c + 1) * v] = 1.0
    sel = jnp.asarray(sel_np)
    # Static per-lane target id: lane % V.
    lanev = jnp.asarray((np.arange(cv) % v).astype(np.float32)).reshape(1, cv)

    # NOTE: if C*V is not a multiple of 128 the output store becomes a masked
    # vst (still correct; lane-pad downstream-aware if perf matters there).
    out = pl.pallas_call(
        _onehot_flat_kernel,
        out_shape=jax.ShapeDtypeStruct((n, cv), jnp.float32),
        grid=grid,
        in_specs=[
            pl.BlockSpec((tm_eff, c_dim), lambda i: (i, 0)),   # row ids
            pl.BlockSpec((c_dim, cv), lambda i: (0, 0)),       # constant S
            pl.BlockSpec((1, cv), lambda i: (0, 0)),           # constant lane%V
        ],
        out_specs=pl.BlockSpec((tm_eff, cv), lambda i: (i, 0)),
        compiler_params=pltpu.CompilerParams(
            dimension_semantics=("parallel",)),
        cost_estimate=pl.CostEstimate(
            flops=2 * n * c_dim * cv,
            transcendentals=0,
            bytes_accessed=n * c_dim * 4 + n * cv * 4 + sel_np.size * 4),
    )(rows, sel, lanev)

    return out.reshape(*lead, cv)


class OneHot:
    """JAX/Pallas port of models/chatemg.py::OneHot."""

    def __init__(self, output_size):
        self.output_size = int(output_size)

    def __call__(self, x):
        return one_hot_flatten(x, self.output_size)


# ------------------------------------------------------------- reference ----

def _reference(x, num_classes):
    oh = jax.nn.one_hot(jnp.asarray(x).astype(jnp.int32), num_classes,
                        dtype=jnp.float32)                        # [..., C, V]
    return oh.reshape(*oh.shape[:-2], oh.shape[-2] * oh.shape[-1])


# ------------------------------------------------------------------ main ----

if __name__ == "__main__":
    key = jax.random.PRNGKey(0)

    # chatemg-style shapes: 8 EMG channels, vocab 16 -> C*V = 128 output lanes.
    B, T, C, V = 2, 8, 8, 16
    k1, k2, k3 = jax.random.split(key, 3)

    mod = OneHot(V)

    # Case 1: main shape, single full block.
    x1 = jax.random.randint(k1, (B, T, C), 0, V, dtype=jnp.int32)
    out1 = jax.block_until_ready(mod(x1))
    ref1 = _reference(x1, V)
    assert out1.shape == (B, T, C * V), out1.shape
    assert jnp.allclose(out1, ref1, atol=1e-6, rtol=1e-6)

    # Case 2: ragged row count (3*7 = 21 rows -> masked boundary block).
    x2 = jax.random.randint(k2, (3, 7, C), 0, V, dtype=jnp.int32)
    out2 = jax.block_until_ready(mod(x2))
    ref2 = _reference(x2, V)
    assert out2.shape == (3, 7, C * V), out2.shape
    assert jnp.allclose(out2, ref2, atol=1e-6, rtol=1e-6)

    # Case 3: force a multi-step grid with a ragged tail (tm=16, n=50 rows).
    x3 = jax.random.randint(k3, (5, 10, C), 0, V, dtype=jnp.int32)
    out3 = jax.block_until_ready(one_hot_flatten(x3, V, tm=16))
    ref3 = _reference(x3, V)
    assert out3.shape == (5, 10, C * V), out3.shape
    assert jnp.allclose(out3, ref3, atol=1e-6, rtol=1e-6)

    print("KERNEL_OK")
</pallas_src>

<mosaic_0001>
module attributes {stable_mosaic.version = 11 : i64} {
  func.func @_onehot_flat_kernel(%arg0: i32, %arg1: memref<16x8xi32, #tpu.memory_space<vmem>>, %arg2: memref<8x128xf32, #tpu.memory_space<vmem>>, %arg3: memref<1x128xf32, #tpu.memory_space<vmem>>, %arg4: memref<16x128xf32, #tpu.memory_space<vmem>>) attributes {dimension_semantics = [#tpu.dimension_semantics<parallel>], iteration_bounds = array<i64: 1>, scalar_prefetch = 0 : i64, scratch_operands = 0 : i64, tpu.core_type = #tpu.core_type<tc>, window_params = [{transform_indices = @transform_0, window_bounds = array<i64: 16, 8>}, {pipeline_mode = #tpu.pipeline_mode<synchronous>, transform_indices = @transform_1, window_bounds = array<i64: 8, 128>}, {pipeline_mode = #tpu.pipeline_mode<synchronous>, transform_indices = @transform_2, window_bounds = array<i64: 1, 128>}, {transform_indices = @transform_3, window_bounds = array<i64: 16, 128>}]} {
    %c0 = arith.constant 0 : index
    %c0_0 = arith.constant 0 : index
    %0 = vector.load %arg1[%c0, %c0_0] : memref<16x8xi32, #tpu.memory_space<vmem>>, vector<16x8xi32>
    %1 = arith.sitofp %0 : vector<16x8xi32> to vector<16x8xf32>
    %c0_1 = arith.constant 0 : index
    %c0_2 = arith.constant 0 : index
    %2 = vector.load %arg2[%c0_1, %c0_2] : memref<8x128xf32, #tpu.memory_space<vmem>>, vector<8x128xf32>
    %cst = arith.constant dense<0.000000e+00> : vector<16x128xf32>
    %3 = tpu.matmul %1, %2, %cst {dimension_numbers = #tpu.dot_dimension_numbers<[1], [0], [0], [1], [0, 0, 1, 1], [], []>} : vector<16x8xf32>, vector<8x128xf32>, vector<16x128xf32> -> vector<16x128xf32>
    %c0_3 = arith.constant 0 : index
    %c0_4 = arith.constant 0 : index
    %4 = vector.load %arg3[%c0_3, %c0_4] : memref<1x128xf32, #tpu.memory_space<vmem>>, vector<1x128xf32>
    %5 = vector.broadcast %4 : vector<1x128xf32> to vector<16x128xf32>
    %6 = arith.cmpf oeq, %3, %5 : vector<16x128xf32>
    %7 = arith.extui %6 : vector<16x128xi1> to vector<16x128xi32>
    %8 = arith.sitofp %7 : vector<16x128xi32> to vector<16x128xf32>
    %c0_5 = arith.constant 0 : index
    %c0_6 = arith.constant 0 : index
    %9 = vector.load %arg4[%c0_5, %c0_6] : memref<16x128xf32, #tpu.memory_space<vmem>>, vector<16x128xf32>
    tpu.vector_store %arg4[%c0_5, %c0_6], %8 {strides = array<i32>} : memref<16x128xf32, #tpu.memory_space<vmem>>, vector<16x128xf32>,
    return
  }
  func.func @transform_0(%arg0: i32) -> (i32, i32) {
    %c0_i32 = arith.constant 0 : i32
    %c0_i32_0 = arith.constant 0 : i32
    return %arg0, %c0_i32 : i32, i32
  }
  func.func @transform_1(%arg0: i32) -> (i32, i32) {
    %c0_i32 = arith.constant 0 : i32
    %c0_i32_0 = arith.constant 0 : i32
    %c0_i32_1 = arith.constant 0 : i32
    return %c0_i32, %c0_i32_0 : i32, i32
  }
  func.func @transform_2(%arg0: i32) -> (i32, i32) {
    %c0_i32 = arith.constant 0 : i32
    %c0_i32_0 = arith.constant 0 : i32
    %c0_i32_1 = arith.constant 0 : i32
    return %c0_i32, %c0_i32_0 : i32, i32
  }
  func.func @transform_3(%arg0: i32) -> (i32, i32) {
    %c0_i32 = arith.constant 0 : i32
    %c0_i32_0 = arith.constant 0 : i32
    return %arg0, %c0_i32 : i32, i32
  }
}

</mosaic_0001>

<bundles_post_ra>
// kernel: tpu_custom_call.1
= control target key start
LH: loop header
LB: loop body
LE: loop exit
PB: predicated region body
PF: predicated region fallthrough
CT: control target
= control target key end

     0   :  { %vm20_vm0 = vcmask 64512   ;;  %s222_s0 = inlined_call_operand.vmem [shape: s32[16,8], index: 0, kind: input, shape index: {}]   ;;  %s223_s1 = inlined_call_operand.vmem [shape: f32[8,128], index: 1, kind: input, shape index: {}]   ;;  %s224_s2 = inlined_call_operand.vmem [shape: f32[1,128], index: 2, kind: input, shape index: {}]   ;;  %s225_s3 = inlined_call_operand.hbm [shape: f32[16,128], index: 3, kind: output, shape index: {}]  }
   0x1   :  { %v19_v0 = vld [vmem:[%s223_s1] sm:$0xff]  ;;  %v16_v2 = vld [vmem:[%s222_s0 + $0x8] sm:$0xff] }
   0x2   :  { %v15_v1 = vld [vmem:[%s222_s0] sm:$0xff]  ;;  %141 = vmatprep.subr.mxu0 %v19_v0  ;;  %v18_v4 = vcvt.s32.f32 %v16_v2 }
   0x3   :  { %v17_v3 = vcvt.s32.f32 %v15_v1 }
   0x4   :  { %8 = vsyncpa [#allocation3], 0  ;;  %142 = vmatpush3.msra.mxu0 %v19_v0  ;;  %v135_v5 = vld [vmem:[%s224_s2] ss:$0 sm:$0xff]  ;;  %s174_s1 = smov [#allocation2]   ;;  %v175_v8 = vmov 0.0  }
   0x5   :  { %143 = vmatprep.mubr.msk.f32.mxu0 %vm20_vm0, %v17_v3  ;;  %s122_s20 = sshll.u32 %s174_s1, 4  ;;  %s123_s20 = int_to_ptr.vmem [resolvable:$true] %s122_s20 }
   0x6   :  { %144 = vmatmul.mubr.msk.f32.vlgmr.msra.gmra.mrb[0].mxu0 %vm20_vm0, %v18_v4  ;;  %s150_s0 = scalar_lea.vmem %s123_s20, 256  ;;  %p155_p1 = scmp.lt.s32.totalorder %s123_s20, %s123_s20 }
   0x7   :  { %p151_p0 = scmp.ne.s32.totalorder %s123_s20, %s150_s0  ;;  %p156_p2 = scmp.lt.s32.totalorder %s150_s0, %s150_s0 }
   0x9   :  { %p157_p3 = por %p156_p2, %p155_p1 }
   0xb   :  { %p158_p4 = pnand %p157_p3, %p151_p0 }
  0xd9   :  { %v145_v6 = vpop.f32.mrb[0].mxu0 }
  0xda   :  { %vm110_vm1 = vcmp.eq.f32.partialorder %v145_v6, %v135_v5  ;;  %v93_v7 = vpop.f32.mrb[1].mxu0 }
  0xdb   :  { %v137_v9 = vsel %vm110_vm1, 1.0, %v175_v8  ;;  %vm109_vm2 = vcmp.eq.f32.partialorder %v93_v7, %v135_v5 }
  0xdc   :  { %116 = vst [vmem:[#allocation2 + $0x8] sm:$0xff] %v137_v9  ;;  %v136_v10 = vsel %vm109_vm2, 1.0, %v175_v8 }
  0xdd   :  { %115 = vst [vmem:[#allocation2] sm:$0xff] %v136_v10 }
  0xde   :  { %161 = shalt.err (!%p158_p4)
}
  0xdf   :  { %s162_s22 = scalar_lea.hbm %s225_s3, 256 }
  0xe0   :  { %p163_p5 = scmp.ne.s32.totalorder %s225_s3, %s162_s22  ;;  %p166_p6 = scmp.lt.u32.totalorder %s162_s22, %s225_s3 }
  0xe2   :  { %p168_p7 = pnand %p166_p6, %p163_p5 }
  0xe4   :  { %171 = shalt.err (!%p168_p7)
}
  0xe5   :  { %s176_s27 = smov 128   ;;  %s177_s28 = smov 8  }
  0xe6   :  { %128 = dma.vmem_to_hbm [thread:$0]  %s123_s20, 256, %s225_s3, [#allocation3], %s176_s27, %s176_s27, %s177_s28  }
  0xe7   :  { %172 = dma.done.wait [#allocation3], 256  }
  0xe8   :  { %173 = vsyncadd [#allocation3], 4294967040 }
  0xe9   :  { %132 = vsyncpa [#allocation3], 1 }

</bundles_post_ra>
